<compile_context>
chip_gen: v5e
topology: v5e:2x2
jax: 0.10.0
libtpu: 0.0.40
codegen_flags: <defaults>
</compile_context>

<pallas_src>
import jax
import jax.numpy as jnp
from jax.experimental import pallas as pl
from jax.experimental.pallas import tpu as pltpu

# original PyTorch layer dims, stored as (in_features, out_features)
LAYER_DIMS = [
    (3, 256), (256, 128), (128, 64), (64, 2),   # encoder
    (2, 64), (64, 128), (128, 256), (256, 3),   # decoder
]
N_LAYERS = len(LAYER_DIMS)

N_FUSED = 7                    # after fusing layers 3 & 4
PAD_OUT = 128                  # last fused layer's weight padded 3 -> 128 cols
OUT_DIMS = (256, 128, 64, 64, 128, 256, PAD_OUT)   # fused-layer output widths
TB_MAX = 2048                  # max batch rows per tile (VMEM-safe on v5e/v6e/v7x)


# --------------------------------------------------------------------------- #
# kernel
# --------------------------------------------------------------------------- #
def autoencoder_kernel(x_ref, w0_ref, w1_ref, w2_ref, w3_ref, w4_ref, w5_ref,
                       w6_ref, b_ref, out_ref):
    """Full fused MLP on one (TB, 3) batch tile; weights resident in VMEM."""
    bias = b_ref[...]                                   # (8, 256) f32, resident
    x = x_ref[...]                                      # (TB, 3) f32

    # fused layer 0: Linear(3,256)+ReLU on the VPU (K=3 is MXU-hostile), f32
    h = (x[:, 0:1] * w0_ref[0:1, :]
         + x[:, 1:2] * w0_ref[1:2, :]
         + x[:, 2:3] * w0_ref[2:3, :]
         + bias[0:1, :OUT_DIMS[0]])
    h = jnp.maximum(h, 0.0).astype(jnp.bfloat16)

    # fused layers 1..6: bf16 MXU matmuls with f32 accumulation
    w_refs = (w1_ref, w2_ref, w3_ref, w4_ref, w5_ref, w6_ref)
    for li in range(1, N_FUSED):
        acc = jnp.dot(h, w_refs[li - 1][...],
                      preferred_element_type=jnp.float32)
        acc = acc + bias[li:li + 1, :OUT_DIMS[li]]
        if li != N_FUSED - 1:
            h = jnp.maximum(acc, 0.0).astype(jnp.bfloat16)
        else:
            h = acc                                      # (TB, 128) f32

    out_ref[...] = h[:, :3]                              # lane-narrow writeback


# --------------------------------------------------------------------------- #
# parameter construction / preparation
# --------------------------------------------------------------------------- #
def init_params(key):
    """Deterministic synthetic weights mimicking PyTorch Linear default init."""
    params = []
    for (fin, fout) in LAYER_DIMS:
        key, kw, kb = jax.random.split(key, 3)
        bound = 1.0 / (fin ** 0.5)
        w = jax.random.uniform(kw, (fin, fout), jnp.float32, -bound, bound)
        b = jax.random.uniform(kb, (1, fout), jnp.float32, -bound, bound)
        params.append((w, b))
    return params


def prepare_params(params):
    """Fuse layers 3&4 (exact: no activation on the 2-d latent), pad the final
    layer's ragged 3-wide output to 128 lanes, cast MXU weights to bf16 and
    pack all biases into one resident (8,256) f32 array."""
    ws = [w for w, _ in params]
    bs = [b for _, b in params]

    # exact algebraic fusion of Linear(64,2) -> Linear(2,64)
    w34 = ws[3] @ ws[4]                      # (64, 64)
    b34 = bs[3] @ ws[4] + bs[4]              # (1, 64)

    # pad final layer's output features 3 -> 128 (extra columns all-zero)
    w7p = jnp.zeros((256, PAD_OUT), jnp.float32).at[:, :3].set(ws[7])
    b7p = jnp.zeros((1, PAD_OUT), jnp.float32).at[:, :3].set(bs[7])

    fused_w = [
        ws[0],                               # (3,256) f32 — VPU layer
        ws[1].astype(jnp.bfloat16),          # (256,128)
        ws[2].astype(jnp.bfloat16),          # (128,64)
        w34.astype(jnp.bfloat16),            # (64,64)
        ws[5].astype(jnp.bfloat16),          # (64,128)
        ws[6].astype(jnp.bfloat16),          # (128,256)
        w7p.astype(jnp.bfloat16),            # (256,128)
    ]
    fused_b = [bs[0], bs[1], bs[2], b34, bs[5], bs[6], b7p]

    bias_pack = jnp.zeros((8, 256), jnp.float32)
    for li, b in enumerate(fused_b):
        bias_pack = bias_pack.at[li, :b.shape[1]].set(b[0])
    return fused_w, bias_pack


# --------------------------------------------------------------------------- #
# wrapper
# --------------------------------------------------------------------------- #
def _choose_tb(batch, tb_max=TB_MAX):
    """Large tiles for MXU/step-overhead amortization, but keep >=2 tiles for
    v7x's 2 TensorCores when the batch allows it; multiple of 8 sublanes."""
    half = -(-batch // 2)                    # cdiv(batch, 2)
    half = ((half + 7) // 8) * 8             # round up to sublane multiple
    return max(8, min(tb_max, half))


def improved_autoencoder(x, fused_w, bias_pack, *, tb_max=TB_MAX):
    """x: (B, 3) float32 -> (B, 3) float32."""
    B = x.shape[0]
    tb = _choose_tb(B, tb_max)
    n_tiles = pl.cdiv(B, tb)
    B_pad = n_tiles * tb

    x_p = x.astype(jnp.float32)
    if B_pad != B:
        x_p = jnp.pad(x_p, ((0, B_pad - B), (0, 0)))     # padded rows discarded

    in_specs = [pl.BlockSpec((tb, 3), lambda i: (i, 0))]
    for w in fused_w:
        # constant index_map: weights stay VMEM-resident across grid steps
        in_specs.append(pl.BlockSpec(w.shape, lambda i: (0, 0)))
    in_specs.append(pl.BlockSpec(bias_pack.shape, lambda i: (0, 0)))
    out_specs = pl.BlockSpec((tb, 3), lambda i: (i, 0))

    flops = 2 * B_pad * sum(w.shape[0] * w.shape[1] for w in fused_w)
    bytes_accessed = (B_pad * 3 * 4 * 2
                      + sum(w.size * w.dtype.itemsize for w in fused_w)
                      + bias_pack.size * 4)

    out = pl.pallas_call(
        autoencoder_kernel,
        out_shape=jax.ShapeDtypeStruct((B_pad, 3), jnp.float32),
        grid_spec=pltpu.PrefetchScalarGridSpec(
            num_scalar_prefetch=0,
            grid=(n_tiles,),
            in_specs=in_specs,
            out_specs=out_specs,
        ),
        compiler_params=pltpu.CompilerParams(
            dimension_semantics=("parallel",),          # shard tiles across TCs
            vmem_limit_bytes=48 * 1024 * 1024,          # > v5e's 16 MiB default
        ),
        cost_estimate=pl.CostEstimate(flops=flops, transcendentals=0,
                                      bytes_accessed=bytes_accessed),
    )(x_p, *fused_w, bias_pack)

    return out[:B]


# --------------------------------------------------------------------------- #
# references
# --------------------------------------------------------------------------- #
def reference_forward_f32(x, params):
    """Pure-JAX f32 reference with original (unfused, unpadded) params."""
    h = x
    for li, (w, b) in enumerate(params):
        h = h @ w + b
        if li != 3 and li != N_LAYERS - 1:   # no ReLU after latent or final layer
            h = jnp.maximum(h, 0.0)
    return h


def reference_forward_fused(x, fused_w, bias_pack):
    """Pure-JAX reference mirroring the kernel arithmetic exactly."""
    w0 = fused_w[0]
    h = (x[:, 0:1] * w0[0:1, :] + x[:, 1:2] * w0[1:2, :]
         + x[:, 2:3] * w0[2:3, :] + bias_pack[0:1, :OUT_DIMS[0]])
    h = jnp.maximum(h, 0.0).astype(jnp.bfloat16)
    for li in range(1, N_FUSED):
        acc = jnp.dot(h, fused_w[li], preferred_element_type=jnp.float32)
        acc = acc + bias_pack[li:li + 1, :OUT_DIMS[li]]
        if li != N_FUSED - 1:
            h = jnp.maximum(acc, 0.0).astype(jnp.bfloat16)
        else:
            h = acc
    return h[:, :3]


# --------------------------------------------------------------------------- #
# smoke test
# --------------------------------------------------------------------------- #
if __name__ == "__main__":
    key = jax.random.PRNGKey(0)
    key, kx = jax.random.split(key)

    params = init_params(key)
    fused_w, bias_pack = prepare_params(params)

    # small single-tile case
    B = 8
    x = jax.random.normal(kx, (B, 3), jnp.float32)
    out = jax.block_until_ready(improved_autoencoder(x, fused_w, bias_pack))
    assert out.shape == (B, 3)

    ref_fused = reference_forward_fused(x, fused_w, bias_pack)
    assert jnp.allclose(out, ref_fused, atol=1e-3, rtol=1e-3), \
        "mismatch vs fused bf16 reference"

    ref_f32 = reference_forward_f32(x, params)
    max_err = float(jnp.max(jnp.abs(out - ref_f32)))
    assert max_err < 5e-2, f"mismatch vs f32 reference: max_err={max_err}"

    # multi-tile + batch-padding path (grid > 1, B not a multiple of tb)
    B2 = 37
    x2 = jax.random.normal(jax.random.PRNGKey(1), (B2, 3), jnp.float32)
    out2 = jax.block_until_ready(improved_autoencoder(x2, fused_w, bias_pack))
    assert out2.shape == (B2, 3)
    ref2 = reference_forward_fused(x2, fused_w, bias_pack)
    assert jnp.allclose(out2, ref2, atol=1e-3, rtol=1e-3), \
        "mismatch vs fused bf16 reference (multi-tile)"

    print("KERNEL_OK")
</pallas_src>

<mosaic_0001>
module attributes {stable_mosaic.version = 11 : i64} {
  func.func @autoencoder_kernel(%arg0: i32, %arg1: memref<8x3xf32, #tpu.memory_space<vmem>>, %arg2: memref<3x256xf32, #tpu.memory_space<vmem>>, %arg3: memref<256x128xbf16, #tpu.memory_space<vmem>>, %arg4: memref<128x64xbf16, #tpu.memory_space<vmem>>, %arg5: memref<64x64xbf16, #tpu.memory_space<vmem>>, %arg6: memref<64x128xbf16, #tpu.memory_space<vmem>>, %arg7: memref<128x256xbf16, #tpu.memory_space<vmem>>, %arg8: memref<256x128xbf16, #tpu.memory_space<vmem>>, %arg9: memref<8x256xf32, #tpu.memory_space<vmem>>, %arg10: memref<8x3xf32, #tpu.memory_space<vmem>>) attributes {dimension_semantics = [#tpu.dimension_semantics<parallel>], iteration_bounds = array<i64: 1>, scalar_prefetch = 0 : i64, scratch_operands = 0 : i64, tpu.core_type = #tpu.core_type<tc>, window_params = [{transform_indices = @transform_0, window_bounds = array<i64: 8, 3>}, {pipeline_mode = #tpu.pipeline_mode<synchronous>, transform_indices = @transform_1, window_bounds = array<i64: 3, 256>}, {pipeline_mode = #tpu.pipeline_mode<synchronous>, transform_indices = @transform_2, window_bounds = array<i64: 256, 128>}, {pipeline_mode = #tpu.pipeline_mode<synchronous>, transform_indices = @transform_3, window_bounds = array<i64: 128, 64>}, {pipeline_mode = #tpu.pipeline_mode<synchronous>, transform_indices = @transform_4, window_bounds = array<i64: 64, 64>}, {pipeline_mode = #tpu.pipeline_mode<synchronous>, transform_indices = @transform_5, window_bounds = array<i64: 64, 128>}, {pipeline_mode = #tpu.pipeline_mode<synchronous>, transform_indices = @transform_6, window_bounds = array<i64: 128, 256>}, {pipeline_mode = #tpu.pipeline_mode<synchronous>, transform_indices = @transform_7, window_bounds = array<i64: 256, 128>}, {pipeline_mode = #tpu.pipeline_mode<synchronous>, transform_indices = @transform_8, window_bounds = array<i64: 8, 256>}, {transform_indices = @transform_9, window_bounds = array<i64: 8, 3>}]} {
    %c0 = arith.constant 0 : index
    %c0_0 = arith.constant 0 : index
    %0 = vector.load %arg9[%c0, %c0_0] : memref<8x256xf32, #tpu.memory_space<vmem>>, vector<8x256xf32>
    %c0_1 = arith.constant 0 : index
    %c0_2 = arith.constant 0 : index
    %1 = vector.load %arg1[%c0_1, %c0_2] : memref<8x3xf32, #tpu.memory_space<vmem>>, vector<8x3xf32>
    %2 = vector.extract_strided_slice %1 {offsets = [0, 0], sizes = [8, 1], strides = [1, 1]} : vector<8x3xf32> to vector<8x1xf32>
    %c0_3 = arith.constant 0 : index
    %c0_4 = arith.constant 0 : index
    %3 = vector.load %arg2[%c0_3, %c0_4] : memref<3x256xf32, #tpu.memory_space<vmem>>, vector<1x256xf32>
    %4 = vector.broadcast %2 : vector<8x1xf32> to vector<8x256xf32>
    %5 = vector.broadcast %3 : vector<1x256xf32> to vector<8x256xf32>
    %6 = arith.mulf %4, %5 : vector<8x256xf32>
    %7 = vector.extract_strided_slice %1 {offsets = [0, 1], sizes = [8, 1], strides = [1, 1]} : vector<8x3xf32> to vector<8x1xf32>
    %c1 = arith.constant 1 : index
    %c0_5 = arith.constant 0 : index
    %8 = vector.load %arg2[%c1, %c0_5] : memref<3x256xf32, #tpu.memory_space<vmem>>, vector<1x256xf32>
    %9 = vector.broadcast %7 : vector<8x1xf32> to vector<8x256xf32>
    %10 = vector.broadcast %8 : vector<1x256xf32> to vector<8x256xf32>
    %11 = arith.mulf %9, %10 : vector<8x256xf32>
    %12 = arith.addf %6, %11 : vector<8x256xf32>
    %13 = vector.extract_strided_slice %1 {offsets = [0, 2], sizes = [8, 1], strides = [1, 1]} : vector<8x3xf32> to vector<8x1xf32>
    %c2 = arith.constant 2 : index
    %c0_6 = arith.constant 0 : index
    %14 = vector.load %arg2[%c2, %c0_6] : memref<3x256xf32, #tpu.memory_space<vmem>>, vector<1x256xf32>
    %15 = vector.broadcast %13 : vector<8x1xf32> to vector<8x256xf32>
    %16 = vector.broadcast %14 : vector<1x256xf32> to vector<8x256xf32>
    %17 = arith.mulf %15, %16 : vector<8x256xf32>
    %18 = arith.addf %12, %17 : vector<8x256xf32>
    %19 = vector.extract_strided_slice %0 {offsets = [0, 0], sizes = [1, 256], strides = [1, 1]} : vector<8x256xf32> to vector<1x256xf32>
    %20 = vector.broadcast %19 : vector<1x256xf32> to vector<8x256xf32>
    %21 = arith.addf %18, %20 : vector<8x256xf32>
    %cst = arith.constant 0.000000e+00 : f32
    %22 = vector.broadcast %cst : f32 to vector<8x256xf32>
    %23 = arith.maximumf %21, %22 : vector<8x256xf32>
    %24 = arith.truncf %23 : vector<8x256xf32> to vector<8x256xbf16>
    %c0_7 = arith.constant 0 : index
    %c0_8 = arith.constant 0 : index
    %25 = vector.load %arg3[%c0_7, %c0_8] : memref<256x128xbf16, #tpu.memory_space<vmem>>, vector<256x128xbf16>
    %cst_9 = arith.constant dense<0.000000e+00> : vector<8x128xf32>
    %26 = tpu.matmul %24, %25, %cst_9 {dimension_numbers = #tpu.dot_dimension_numbers<[1], [0], [0], [1], [0, 0, 1, 1], [], []>} : vector<8x256xbf16>, vector<256x128xbf16>, vector<8x128xf32> -> vector<8x128xf32>
    %27 = vector.extract_strided_slice %0 {offsets = [1, 0], sizes = [1, 128], strides = [1, 1]} : vector<8x256xf32> to vector<1x128xf32>
    %28 = vector.broadcast %27 : vector<1x128xf32> to vector<8x128xf32>
    %29 = arith.addf %26, %28 : vector<8x128xf32>
    %cst_10 = arith.constant 0.000000e+00 : f32
    %30 = vector.broadcast %cst_10 : f32 to vector<8x128xf32>
    %31 = arith.maximumf %29, %30 : vector<8x128xf32>
    %32 = arith.truncf %31 : vector<8x128xf32> to vector<8x128xbf16>
    %c0_11 = arith.constant 0 : index
    %c0_12 = arith.constant 0 : index
    %33 = vector.load %arg4[%c0_11, %c0_12] : memref<128x64xbf16, #tpu.memory_space<vmem>>, vector<128x64xbf16>
    %cst_13 = arith.constant dense<0.000000e+00> : vector<8x64xf32>
    %34 = tpu.matmul %32, %33, %cst_13 {dimension_numbers = #tpu.dot_dimension_numbers<[1], [0], [0], [1], [0, 0, 1, 1], [], []>} : vector<8x128xbf16>, vector<128x64xbf16>, vector<8x64xf32> -> vector<8x64xf32>
    %35 = vector.extract_strided_slice %0 {offsets = [2, 0], sizes = [1, 64], strides = [1, 1]} : vector<8x256xf32> to vector<1x64xf32>
    %36 = vector.broadcast %35 : vector<1x64xf32> to vector<8x64xf32>
    %37 = arith.addf %34, %36 : vector<8x64xf32>
    %cst_14 = arith.constant 0.000000e+00 : f32
    %38 = vector.broadcast %cst_14 : f32 to vector<8x64xf32>
    %39 = arith.maximumf %37, %38 : vector<8x64xf32>
    %40 = arith.truncf %39 : vector<8x64xf32> to vector<8x64xbf16>
    %c0_15 = arith.constant 0 : index
    %c0_16 = arith.constant 0 : index
    %41 = vector.load %arg5[%c0_15, %c0_16] : memref<64x64xbf16, #tpu.memory_space<vmem>>, vector<64x64xbf16>
    %cst_17 = arith.constant dense<0.000000e+00> : vector<8x64xf32>
    %42 = tpu.matmul %40, %41, %cst_17 {dimension_numbers = #tpu.dot_dimension_numbers<[1], [0], [0], [1], [0, 0, 1, 1], [], []>} : vector<8x64xbf16>, vector<64x64xbf16>, vector<8x64xf32> -> vector<8x64xf32>
    %43 = vector.extract_strided_slice %0 {offsets = [3, 0], sizes = [1, 64], strides = [1, 1]} : vector<8x256xf32> to vector<1x64xf32>
    %44 = vector.broadcast %43 : vector<1x64xf32> to vector<8x64xf32>
    %45 = arith.addf %42, %44 : vector<8x64xf32>
    %cst_18 = arith.constant 0.000000e+00 : f32
    %46 = vector.broadcast %cst_18 : f32 to vector<8x64xf32>
    %47 = arith.maximumf %45, %46 : vector<8x64xf32>
    %48 = arith.truncf %47 : vector<8x64xf32> to vector<8x64xbf16>
    %c0_19 = arith.constant 0 : index
    %c0_20 = arith.constant 0 : index
    %49 = vector.load %arg6[%c0_19, %c0_20] : memref<64x128xbf16, #tpu.memory_space<vmem>>, vector<64x128xbf16>
    %cst_21 = arith.constant dense<0.000000e+00> : vector<8x128xf32>
    %50 = tpu.matmul %48, %49, %cst_21 {dimension_numbers = #tpu.dot_dimension_numbers<[1], [0], [0], [1], [0, 0, 1, 1], [], []>} : vector<8x64xbf16>, vector<64x128xbf16>, vector<8x128xf32> -> vector<8x128xf32>
    %51 = vector.extract_strided_slice %0 {offsets = [4, 0], sizes = [1, 128], strides = [1, 1]} : vector<8x256xf32> to vector<1x128xf32>
    %52 = vector.broadcast %51 : vector<1x128xf32> to vector<8x128xf32>
    %53 = arith.addf %50, %52 : vector<8x128xf32>
    %cst_22 = arith.constant 0.000000e+00 : f32
    %54 = vector.broadcast %cst_22 : f32 to vector<8x128xf32>
    %55 = arith.maximumf %53, %54 : vector<8x128xf32>
    %56 = arith.truncf %55 : vector<8x128xf32> to vector<8x128xbf16>
    %c0_23 = arith.constant 0 : index
    %c0_24 = arith.constant 0 : index
    %57 = vector.load %arg7[%c0_23, %c0_24] : memref<128x256xbf16, #tpu.memory_space<vmem>>, vector<128x256xbf16>
    %cst_25 = arith.constant dense<0.000000e+00> : vector<8x256xf32>
    %58 = tpu.matmul %56, %57, %cst_25 {dimension_numbers = #tpu.dot_dimension_numbers<[1], [0], [0], [1], [0, 0, 1, 1], [], []>} : vector<8x128xbf16>, vector<128x256xbf16>, vector<8x256xf32> -> vector<8x256xf32>
    %59 = vector.extract_strided_slice %0 {offsets = [5, 0], sizes = [1, 256], strides = [1, 1]} : vector<8x256xf32> to vector<1x256xf32>
    %60 = vector.broadcast %59 : vector<1x256xf32> to vector<8x256xf32>
    %61 = arith.addf %58, %60 : vector<8x256xf32>
    %cst_26 = arith.constant 0.000000e+00 : f32
    %62 = vector.broadcast %cst_26 : f32 to vector<8x256xf32>
    %63 = arith.maximumf %61, %62 : vector<8x256xf32>
    %64 = arith.truncf %63 : vector<8x256xf32> to vector<8x256xbf16>
    %c0_27 = arith.constant 0 : index
    %c0_28 = arith.constant 0 : index
    %65 = vector.load %arg8[%c0_27, %c0_28] : memref<256x128xbf16, #tpu.memory_space<vmem>>, vector<256x128xbf16>
    %cst_29 = arith.constant dense<0.000000e+00> : vector<8x128xf32>
    %66 = tpu.matmul %64, %65, %cst_29 {dimension_numbers = #tpu.dot_dimension_numbers<[1], [0], [0], [1], [0, 0, 1, 1], [], []>} : vector<8x256xbf16>, vector<256x128xbf16>, vector<8x128xf32> -> vector<8x128xf32>
    %67 = vector.extract_strided_slice %0 {offsets = [6, 0], sizes = [1, 128], strides = [1, 1]} : vector<8x256xf32> to vector<1x128xf32>
    %68 = vector.broadcast %67 : vector<1x128xf32> to vector<8x128xf32>
    %69 = arith.addf %66, %68 : vector<8x128xf32>
    %70 = vector.extract_strided_slice %69 {offsets = [0, 0], sizes = [8, 3], strides = [1, 1]} : vector<8x128xf32> to vector<8x3xf32>
    %c0_30 = arith.constant 0 : index
    %c0_31 = arith.constant 0 : index
    %71 = vector.load %arg10[%c0_30, %c0_31] : memref<8x3xf32, #tpu.memory_space<vmem>>, vector<8x3xf32>
    tpu.vector_store %arg10[%c0_30, %c0_31], %70 {strides = array<i32>} : memref<8x3xf32, #tpu.memory_space<vmem>>, vector<8x3xf32>,
    return
  }
  func.func @transform_0(%arg0: i32) -> (i32, i32) {
    %c0_i32 = arith.constant 0 : i32
    %c0_i32_0 = arith.constant 0 : i32
    return %arg0, %c0_i32 : i32, i32
  }
  func.func @transform_1(%arg0: i32) -> (i32, i32) {
    %c0_i32 = arith.constant 0 : i32
    %c0_i32_0 = arith.constant 0 : i32
    %c0_i32_1 = arith.constant 0 : i32
    return %c0_i32, %c0_i32_0 : i32, i32
  }
  func.func @transform_2(%arg0: i32) -> (i32, i32) {
    %c0_i32 = arith.constant 0 : i32
    %c0_i32_0 = arith.constant 0 : i32
    %c0_i32_1 = arith.constant 0 : i32
    return %c0_i32, %c0_i32_0 : i32, i32
  }
  func.func @transform_3(%arg0: i32) -> (i32, i32) {
    %c0_i32 = arith.constant 0 : i32
    %c0_i32_0 = arith.constant 0 : i32
    %c0_i32_1 = arith.constant 0 : i32
    return %c0_i32, %c0_i32_0 : i32, i32
  }
  func.func @transform_4(%arg0: i32) -> (i32, i32) {
    %c0_i32 = arith.constant 0 : i32
    %c0_i32_0 = arith.constant 0 : i32
    %c0_i32_1 = arith.constant 0 : i32
    return %c0_i32, %c0_i32_0 : i32, i32
  }
  func.func @transform_5(%arg0: i32) -> (i32, i32) {
    %c0_i32 = arith.constant 0 : i32
    %c0_i32_0 = arith.constant 0 : i32
    %c0_i32_1 = arith.constant 0 : i32
    return %c0_i32, %c0_i32_0 : i32, i32
  }
  func.func @transform_6(%arg0: i32) -> (i32, i32) {
    %c0_i32 = arith.constant 0 : i32
    %c0_i32_0 = arith.constant 0 : i32
    %c0_i32_1 = arith.constant 0 : i32
    return %c0_i32, %c0_i32_0 : i32, i32
  }
  func.func @transform_7(%arg0: i32) -> (i32, i32) {
    %c0_i32 = arith.constant 0 : i32
    %c0_i32_0 = arith.constant 0 : i32
    %c0_i32_1 = arith.constant 0 : i32
    return %c0_i32, %c0_i32_0 : i32, i32
  }
  func.func @transform_8(%arg0: i32) -> (i32, i32) {
    %c0_i32 = arith.constant 0 : i32
    %c0_i32_0 = arith.constant 0 : i32
    %c0_i32_1 = arith.constant 0 : i32
    return %c0_i32, %c0_i32_0 : i32, i32
  }
  func.func @transform_9(%arg0: i32) -> (i32, i32) {
    %c0_i32 = arith.constant 0 : i32
    %c0_i32_0 = arith.constant 0 : i32
    return %arg0, %c0_i32 : i32, i32
  }
}

</mosaic_0001>

<bundles_post_ra>
// kernel: tpu_custom_call.1
= control target key start
LH: loop header
LB: loop body
LE: loop exit
PB: predicated region body
PF: predicated region fallthrough
CT: control target
= control target key end

     0   :  { %14 = vsyncpa [#allocation3], 0  ;;  %s1332_s0 = inlined_call_operand.vmem [shape: f32[8,3], index: 0, kind: input, shape index: {}]   ;;  %s1333_s1 = inlined_call_operand.vmem [shape: f32[3,256], index: 1, kind: input, shape index: {}]   ;;  %s1334_s2 = inlined_call_operand.hbm [shape: bf16[256,128], index: 2, kind: input, shape index: {}]   ;;  %s1335_s3 = inlined_call_operand.vmem [shape: bf16[128,64], index: 3, kind: input, shape index: {}]   ;;  %s1336_s4 = inlined_call_operand.vmem [shape: bf16[64,64], index: 4, kind: input, shape index: {}]   ;;  %s1337_s5 = inlined_call_operand.vmem [shape: bf16[64,128], index: 5, kind: input, shape index: {}]   ;;  %s1338_s6 = inlined_call_operand.hbm [shape: bf16[128,256], index: 6, kind: input, shape index: {}]   ;;  %s1339_s7 = inlined_call_operand.hbm [shape: bf16[256,128], index: 7, kind: input, shape index: {}]   ;;  %s1340_s8 = inlined_call_operand.vmem [shape: f32[8,256], index: 8, kind: input, shape index: {}]   ;;  %s1341_s9 = inlined_call_operand.vmem [shape: f32[8,3], index: 9, kind: output, shape index: {}]  }
   0x1   :  { %15 = vsyncpa [#allocation5], 0  ;;  %s43_s11 = sshll.u32 %s1338_s6, 4  ;;  %s1179_s12 = smov [#allocation4]   ;;  %s44_s11 = int_to_ptr.hbm [resolvable:$true] %s43_s11 }
   0x2   :  { %s45_s13 = sshll.u32 %s1179_s12, 4  ;;  %s24_s16 = sshll.u32 %s1334_s2, 4  ;;  %s46_s13 = int_to_ptr.vmem [resolvable:$true] %s45_s13  ;;  %s25_s16 = int_to_ptr.hbm [resolvable:$true] %s24_s16 }
   0x3   :  { %s1180_s17 = smov 128   ;;  %s1181_s18 = smov 8  }
   0x4   :  { %51 = dma.hbm_to_vmem [thread:$0]  %s44_s11, 2048, %s46_s13, [#allocation5], %s1180_s17, %s1180_s17, %s1181_s18  }
   0x5   :  { %s1182_s19 = smov [#allocation2]   ;;  %s1183_s21 = smov 64  }
   0x6   :  { %s26_s20 = sshll.u32 %s1182_s19, 4  ;;  %s1184_s22 = smov 4   ;;  %s27_s20 = int_to_ptr.vmem [resolvable:$true] %s26_s20 }
   0x7   :  { %32 = dma.hbm_to_vmem [thread:$0]  %s25_s16, 2048, %s27_s20, [#allocation3], %s1183_s21, %s1183_s21, %s1184_s22  }
   0x8   :  { %s56_s24 = sshll.u32 %s1339_s7, 4  ;;  %s1185_s25 = smov [#allocation6]   ;;  %s57_s24 = int_to_ptr.hbm [resolvable:$true] %s56_s24 }
   0x9   :  { %s58_s26 = sshll.u32 %s1185_s25, 4  ;;  %s59_s26 = int_to_ptr.vmem [resolvable:$true] %s58_s26 }
   0xa   :  { %64 = dma.hbm_to_vmem [thread:$0]  %s57_s24, 2048, %s59_s26, [#allocation5], %s1183_s21, %s1183_s21, %s1184_s22  }
   0xb   :  { %1175 = dma.done.wait [#allocation3], 2048  }
   0xc   :  { %1176 = vsyncadd [#allocation3], 4294965248 }
   0xd   :  { %1177 = dma.done.wait [#allocation5], 4096  }
   0xe   :  { %1178 = vsyncadd [#allocation5], 4294963200  ;;  %v1186_v0 = vmov 0   ;;  %v1187_v1 = vmov 2   ;;  %v82_v2 = vld [vmem:[%s1332_s0] sm:$0xff]  ;;  %v1032_v3 = vld [vmem:[#allocation2 + $0x38] sm:$0xff] }
   0xf   :  { %1099 = vset.pattern.permute.xlu0 %v1186_v0  ;;  %1101 = vset.pattern.permute.xlu1 %v1187_v1  ;;  %v1040_v4 = vld [vmem:[#allocation2 + $0x78] sm:$0xff]  ;;  %v1031_v5 = vld [vmem:[#allocation2 + $0x30] sm:$0xff]  ;;  %v1030_v7 = vld [vmem:[#allocation2 + $0x28] sm:$0xff]  ;;  %v1188_v9 = vmov 1   ;;  %vm404_vm0 = vcmask 523264   ;;  %vm757_vm1 = vcmask 23552  }
  0x10   :  { %86 = vperm.xlu0 %1099, %v82_v2   ;;  %114 = vperm.xlu1 %1101, %v82_v2   ;;  %v1039_v6 = vld [vmem:[#allocation2 + $0x70] sm:$0xff]  ;;  %v1038_v8 = vld [vmem:[#allocation2 + $0x68] sm:$0xff]  ;;  %v1029_v10 = vld [vmem:[#allocation2 + $0x20] sm:$0xff] }
  0x11   :  { %263 = vmatpush.bf16.msra.mxu0 %v1032_v3  ;;  %276 = vmatpush.bf16.msra.mxu1 %v1040_v4  ;;  %v1037_v11 = vld [vmem:[#allocation2 + $0x60] sm:$0xff]  ;;  %v1028_v12 = vld [vmem:[#allocation2 + $0x18] sm:$0xff]  ;;  %v1027_v14 = vld [vmem:[#allocation2 + $0x10] sm:$0xff] }
  0x12   :  { %v1036_v13 = vld [vmem:[#allocation2 + $0x58] sm:$0xff]  ;;  %v1035_v15 = vld [vmem:[#allocation2 + $0x50] sm:$0xff]  ;;  %v1026_v16 = vld [vmem:[#allocation2 + $0x8] sm:$0xff] }
  0x13   :  { %v1034_v17 = vld [vmem:[#allocation2 + $0x48] sm:$0xff]  ;;  %v1025_v18 = vld [vmem:[#allocation2] sm:$0xff]  ;;  %v1048_v20 = vld [vmem:[%s1335_s3 + $0x38] sm:$0xff] }
  0x14   :  { %v1033_v19 = vld [vmem:[#allocation2 + $0x40] sm:$0xff]  ;;  %356 = vmatpush.bf16.msra.mxu2 %v1048_v20  ;;  %v1047_v21 = vld [vmem:[%s1335_s3 + $0x30] sm:$0xff]  ;;  %v1046_v22 = vld [vmem:[%s1335_s3 + $0x28] sm:$0xff] }
  0x15   :  { %264 = vmatpush.bf16.msra.mxu0 %v1031_v5  ;;  %277 = vmatpush.bf16.msra.mxu1 %v1039_v6  ;;  %v1045_v24 = vld [vmem:[%s1335_s3 + $0x20] sm:$0xff]  ;;  %v1044_v28 = vld [vmem:[%s1335_s3 + $0x18] sm:$0xff]  ;;  %v1043_v36 = vld [vmem:[%s1335_s3 + $0x10] sm:$0xff] }
  0x16   :  { %v83_v25 = vld [vmem:[%s1333_s1] ss:$4 sm:$0x3]  ;;  %v765_v26 = vld [vmem:[%s1333_s1 + $0x1] ss:$4 sm:$0x3] }
  0x17   :  { %v766_v27 = vld [vmem:[%s1333_s1 + $0x2] ss:$4 sm:$0x3]  ;;  %v90_v29 = vperm.slane %v83_v25, 0  ;;  %v91_v30 = vperm.slane %v83_v25, 1  ;;  %v103_v31 = vperm.slane %v765_v26, 0 }
  0x18   :  { %1100 = vset.pattern.permute.xlu0 %v1188_v9  ;;  %357 = vmatpush.bf16.msra.mxu2 %v1047_v21  ;;  %v104_v32 = vperm.slane %v765_v26, 1  ;;  %v118_v33 = vperm.slane %v766_v27, 0  ;;  %v119_v34 = vperm.slane %v766_v27, 1  ;;  %v1281_v40 = vld [vmem:[%s1340_s8] sm:$0xff]  ;;  %v1286_v41 = vld [vmem:[%s1340_s8 + $0x8] sm:$0xff]  ;;  %v1052_v60 = vld [vmem:[%s1336_s4 + $0x18] sm:$0xff] }
  0x19   :  { %99 = vperm.xlu0 %1100, %v82_v2   ;;  %265 = vmatpush.bf16.msra.mxu0 %v1030_v7  ;;  %v126_v48 = vperm.slane %v1281_v40, 0  ;;  %v127_v49 = vperm.slane %v1286_v41, 0  ;;  %v1042_v58 = vld [vmem:[%s1335_s3 + $0x8] sm:$0xff]  ;;  %v1041_v59 = vld [vmem:[%s1335_s3] sm:$0xff]  ;;  %v1051_v61 = vld [vmem:[%s1336_s4 + $0x10] sm:$0xff]  ;;  %v166_v62 = vperm.slane %v1281_v40, 1 }
  0x1a   :  { %278 = vmatpush.bf16.msra.mxu1 %v1038_v8  ;;  %412 = vmatpush.bf16.msra.mxu3 %v1052_v60  ;;  %v1050_v7 = vld [vmem:[%s1336_s4 + $0x8] sm:$0xff]  ;;  %v1049_v8 = vld [vmem:[%s1336_s4] sm:$0xff]  ;;  %v1056_v9 = vld [vmem:[%s1337_s5 + $0x18] sm:$0xff] }
  0x1b   :  { %v1072_v20 = vld [vmem:[#allocation4 + $0x74] sm:$0xf0]  ;;  %v1071_v21 = vld [vmem:[#allocation4 + $0x74] sm:$0xf]  ;;  %v1070_v25 = vld [vmem:[#allocation4 + $0x64] sm:$0xf0] }
  0x1c   :  { %358 = vmatpush.bf16.msra.mxu2 %v1046_v22  ;;  %v1069_v27 = vld [vmem:[#allocation4 + $0x64] sm:$0xf] }
  0x1d   :  { %266 = vmatpush.bf16.msra.mxu0 %v1029_v10  ;;  %v1055_v10 = vld [vmem:[%s1337_s5 + $0x10] sm:$0xff] }
  0x1e   :  { %279 = vmatpush.bf16.msra.mxu1 %v1037_v11  ;;  %413 = vmatpush.bf16.msra.mxu3 %v1051_v61  ;;  %v1054_v11 = vld [vmem:[%s1337_s5 + $0x8] sm:$0xff] }
  0x20   :  { %359 = vmatpush.bf16.msra.mxu2 %v1045_v24  ;;  %v947_v24 = vld [vmem:[#allocation4 + $0x60] sm:$0xf] }
  0x21   :  { %1102 = vset.pattern.permute.xlu0 %v1187_v1  ;;  %267 = vmatpush.bf16.msra.mxu0 %v1028_v12  ;;  %v307_v12 = vperm.slane %v1281_v40, 2 }
  0x22   :  { %280 = vmatpush.bf16.msra.mxu1 %v1036_v13  ;;  %414 = vmatpush.bf16.msra.mxu3 %v1050_v7  ;;  %v1057_v7 = vld [vmem:[#allocation4 + $0x4] sm:$0xf] }
  0x24   :  { %360 = vmatpush.bf16.msra.mxu2 %v1044_v28  ;;  %v949_v28 = vld [vmem:[#allocation4 + $0x68] sm:$0xf0] }
  0x25   :  { %268 = vmatpush.bf16.msra.mxu0 %v1027_v14 }
  0x26   :  { %281 = vmatpush.bf16.msra.mxu1 %v1035_v15  ;;  %415 = vmatpush.bf16.msra.mxu3 %v1049_v8 }
  0x28   :  { %361 = vmatpush.bf16.msra.mxu2 %v1043_v36 }
  0x29   :  { %269 = vmatpush.bf16.msra.mxu0 %v1026_v16 }
  0x2a   :  { %282 = vmatpush.bf16.msra.mxu1 %v1034_v17  ;;  %463 = vmatpush.bf16.msrb.mxu3 %v1056_v9  ;;  %v901_v9 = vld [vmem:[#allocation4 + $0x8] sm:$0xf0] }
  0x2c   :  { %362 = vmatpush.bf16.msra.mxu2 %v1042_v58 }
  0x2d   :  { %270 = vmatpush.bf16.msra.mxu0 %v1025_v18  ;;  %v1053_v18 = vld [vmem:[%s1337_s5] sm:$0xff] }
  0x2e   :  { %283 = vmatpush.bf16.msra.mxu1 %v1033_v19  ;;  %464 = vmatpush.bf16.msrb.mxu3 %v1055_v10  ;;  %v955_v19 = vld [vmem:[#allocation4 + $0x70] sm:$0xf]  ;;  %v904_v10 = vor.u32 %v1057_v7, %v901_v9 }
  0x2f   :  { %v956_v22 = vor.u32 %v1072_v20, %v955_v19  ;;  %v1076_v19 = vld [vmem:[#allocation6 + $0x18] sm:$0xff] }
  0x30   :  { %363 = vmatpush.bf16.msra.mxu2 %v1041_v59  ;;  %v1084_v20 = vld [vmem:[#allocation6 + $0x58] sm:$0xff] }
  0x31   :  { %572 = vmatpush.bf16.msrb.mxu0 %v956_v22  ;;  %v1083_v22 = vld [vmem:[#allocation6 + $0x50] sm:$0xff] }
  0x32   :  { %465 = vmatpush.bf16.msrb.mxu3 %v1054_v11  ;;  %v1080_v11 = vld [vmem:[#allocation6 + $0x38] sm:$0xff] }
  0x34   :  { %731 = vmatpush.bf16.msrb.mxu2 %v1080_v11 }
  0x36   :  { %466 = vmatpush.bf16.msrb.mxu3 %v1053_v18  ;;  %v1085_v18 = vld [vmem:[#allocation6 + $0x60] sm:$0xff] }
  0x82   :  { %v87_v23 = vpop.permute.xlu0 %86  ;;  %v115_v35 = vpop.permute.xlu1 %114 }
  0x83   :  { %v94_v37 = vmul.f32 %v90_v29, %v87_v23  ;;  %v95_v38 = vmul.f32 %v91_v30, %v87_v23  ;;  %v122_v44 = vmul.f32 %v118_v33, %v115_v35  ;;  %v123_v45 = vmul.f32 %v119_v34, %v115_v35  ;;  %v957_v23 = vld [vmem:[#allocation4 + $0x78] sm:$0xf0]  ;;  %v1067_v33 = vld [vmem:[#allocation4 + $0x54] sm:$0xf] }
  0x84   :  { %v960_v26 = vor.u32 %v1071_v21, %v957_v23  ;;  %v948_v29 = vor.u32 %v1070_v25, %v947_v24  ;;  %v952_v30 = vor.u32 %v1069_v27, %v949_v28  ;;  %v941_v34 = vld [vmem:[#allocation4 + $0x58] sm:$0xf0]  ;;  %v1075_v21 = vld [vmem:[#allocation6 + $0x10] sm:$0xff]  ;;  %v431_v23 = vperm.slane %v1281_v40, 4 }
  0x85   :  { %v944_v36 = vor.u32 %v1067_v33, %v941_v34  ;;  %v490_v33 = vperm.slane %v1281_v40, 5  ;;  %v491_v34 = vperm.slane %v1286_v41, 5 }
  0x86   :  { %585 = vmatpush.bf16.msrb.mxu1 %v960_v26  ;;  %573 = vmatpush.bf16.msrb.mxu0 %v948_v29  ;;  %v1074_v29 = vld [vmem:[#allocation6 + $0x8] sm:$0xff] }
  0x8a   :  { %586 = vmatpush.bf16.msrb.mxu1 %v952_v30  ;;  %v1082_v30 = vld [vmem:[#allocation6 + $0x48] sm:$0xff] }
  0x8b   :  { %v100_v39 = vpop.permute.xlu0 %99 }
  0x8c   :  { %v107_v42 = vmul.f32 %v103_v31, %v100_v39  ;;  %v108_v43 = vmul.f32 %v104_v32, %v100_v39  ;;  %v939_v31 = vld [vmem:[#allocation4 + $0x50] sm:$0xf]  ;;  %v1068_v32 = vld [vmem:[#allocation4 + $0x54] sm:$0xf0]  ;;  %v1065_v39 = vld [vmem:[#allocation4 + $0x44] sm:$0xf] }
  0x8d   :  { %v940_v35 = vor.u32 %v1068_v32, %v939_v31  ;;  %v1073_v31 = vld [vmem:[#allocation6] sm:$0xff] }
  0x8e   :  { %v109_v46 = vadd.f32 %v107_v42, %v94_v37  ;;  %v110_v47 = vadd.f32 %v108_v43, %v95_v38  ;;  %v931_v37 = vld [vmem:[#allocation4 + $0x40] sm:$0xf]  ;;  %v1066_v38 = vld [vmem:[#allocation4 + $0x44] sm:$0xf0]  ;;  %v933_v42 = vld [vmem:[#allocation4 + $0x48] sm:$0xf0]  ;;  %587 = vmatpush.bf16.msrb.mxu1 %v944_v36 }
  0x8f   :  { %574 = vmatpush.bf16.msrb.mxu0 %v940_v35  ;;  %v932_v43 = vor.u32 %v1066_v38, %v931_v37  ;;  %v1081_v32 = vld [vmem:[#allocation6 + $0x40] sm:$0xff] }
  0x90   :  { %v124_v50 = vadd.f32 %v122_v44, %v109_v46  ;;  %v125_v51 = vadd.f32 %v123_v45, %v110_v47  ;;  %v936_v44 = vor.u32 %v1065_v39, %v933_v42  ;;  %v923_v45 = vld [vmem:[#allocation4 + $0x30] sm:$0xf]  ;;  %v1064_v46 = vld [vmem:[#allocation4 + $0x34] sm:$0xf0]  ;;  %v1063_v47 = vld [vmem:[#allocation4 + $0x34] sm:$0xf] }
  0x92   :  { %v128_v52 = vadd.f32 %v126_v48, %v124_v50  ;;  %v129_v53 = vadd.f32 %v127_v49, %v125_v51  ;;  %v925_v48 = vld [vmem:[#allocation4 + $0x38] sm:$0xf0]  ;;  %v924_v49 = vor.u32 %v1064_v46, %v923_v45  ;;  %588 = vmatpush.bf16.msrb.mxu1 %v936_v44  ;;  %v915_v51 = vld [vmem:[#allocation4 + $0x20] sm:$0xf] }
  0x93   :  { %575 = vmatpush.bf16.msrb.mxu0 %v932_v43  ;;  %v928_v50 = vor.u32 %v1063_v47, %v925_v48  ;;  %v634_v47 = vperm.slane %v1281_v40, 6 }
  0x94   :  { %v130_v54 = vmax.f32 %v128_v52, 0.0  ;;  %v131_v55 = vmax.f32 %v129_v53, 0.0  ;;  %v1062_v52 = vld [vmem:[#allocation4 + $0x24] sm:$0xf0]  ;;  %v1061_v53 = vld [vmem:[#allocation4 + $0x24] sm:$0xf] }
  0x96   :  { %v132_v56 = vpack.c.bf16 %v130_v54, %v130_v54  ;;  %v133_v57 = vpack.c.bf16 %v131_v55, %v131_v55  ;;  %v917_v54 = vld [vmem:[#allocation4 + $0x28] sm:$0xf0]  ;;  %v916_v55 = vor.u32 %v1062_v52, %v915_v51  ;;  %589 = vmatpush.bf16.msrb.mxu1 %v928_v50 }
  0x97   :  { %576 = vmatpush.bf16.msrb.mxu0 %v924_v49 }
  0x98   :  { %271 = vmatmul.bf16.vlgmr.msra.gmra.mxu0 %v132_v56  ;;  %284 = vmatmul.bf16.vlgmr.msra.gmra.mxu1 %v133_v57  ;;  %v920_v56 = vor.u32 %v1061_v53, %v917_v54  ;;  %v379_v57 = vperm.slane %v1281_v40, 3 }
  0x9a   :  { %590 = vmatpush.bf16.msrb.mxu1 %v920_v56 }
  0x9b   :  { %577 = vmatpush.bf16.msrb.mxu0 %v916_v55 }
 0x115   :  { %v272_v63 = vpop.f32.mrf.mxu0  ;;  %v285_v0 = vpop.f32.mrf.mxu1 }
 0x116   :  { %v273_v1 = vadd.f32 %v272_v63, %v166_v62  ;;  %v907_v63 = vld [vmem:[#allocation4 + $0x10] sm:$0xf] }
 0x118   :  { %v286_v2 = vadd.f32 %v285_v0, %v273_v1  ;;  %v1060_v0 = vld [vmem:[#allocation4 + $0x14] sm:$0xf0]  ;;  %v1059_v1 = vld [vmem:[#allocation4 + $0x14] sm:$0xf] }
 0x11a   :  { %v289_v3 = vmax.f32 %v286_v2, 0.0  ;;  %v908_v2 = vor.u32 %v1060_v0, %v907_v63 }
 0x11c   :  { %v290_v4 = vpack.c.bf16 %v289_v3, %v289_v3  ;;  %v909_v3 = vld [vmem:[#allocation4 + $0x18] sm:$0xf0]  ;;  %578 = vmatpush.bf16.msrb.mxu0 %v908_v2 }
 0x11d   :  { %v274_v5 = vpop.f32.mrf.mxu0  ;;  %v287_v6 = vpop.f32.mrf.mxu1 }
 0x11e   :  { %364 = vmatmul.bf16.vlgmr.msra.gmra.mxu2 %v290_v4  ;;  %v912_v4 = vor.u32 %v1059_v1, %v909_v3  ;;  %v899_v5 = vld [vmem:[#allocation4] sm:$0xf]  ;;  %v1058_v6 = vld [vmem:[#allocation4 + $0x4] sm:$0xf0] }
 0x11f   :  { %v900_v8 = vor.u32 %v1058_v6, %v899_v5 }
 0x120   :  { %591 = vmatpush.bf16.msrb.mxu1 %v912_v4 }
 0x121   :  { %579 = vmatpush.bf16.msrb.mxu0 %v900_v8 }
 0x124   :  { %592 = vmatpush.bf16.msrb.mxu1 %v904_v10 }
 0x1a1   :  { %v365_v13 = vpop.f32.mrf.mxu2 }
 0x1a2   :  { %v366_v14 = vadd.f32 %v365_v13, %v307_v12  ;;  %v1088_v12 = vld [vmem:[#allocation6 + $0x78] sm:$0xff]  ;;  %v1079_v13 = vld [vmem:[#allocation6 + $0x30] sm:$0xff] }
 0x1a3   :  { %732 = vmatpush.bf16.msrb.mxu2 %v1079_v13 }
 0x1a4   :  { %v369_v15 = vmax.f32 %v366_v14, 0.0  ;;  %v1087_v14 = vld [vmem:[#allocation6 + $0x70] sm:$0xff] }
 0x1a6   :  { %v370_v16 = vpack.c.bf16 %v369_v15, %v369_v15  ;;  %v1078_v15 = vld [vmem:[#allocation6 + $0x28] sm:$0xff] }
 0x1a7   :  { %733 = vmatpush.bf16.msrb.mxu2 %v1078_v15 }
 0x1a8   :  { %879 = vmatmul.msk.bf16.vlgmr.msra.gmra.mxu3 %vm404_vm0, %v370_v16  ;;  %v1086_v16 = vld [vmem:[#allocation6 + $0x68] sm:$0xff] }
 0x1a9   :  { %v367_v17 = vpop.f32.mrf.mxu2  ;;  %744 = vmatpush.bf16.msra.mxu3 %v1088_v12 }
 0x1aa   :  { %v1077_v17 = vld [vmem:[#allocation6 + $0x20] sm:$0xff] }
 0x1ab   :  { %734 = vmatpush.bf16.msrb.mxu2 %v1077_v17 }
 0x1ad   :  { %745 = vmatpush.bf16.msra.mxu3 %v1087_v14 }
 0x1af   :  { %735 = vmatpush.bf16.msrb.mxu2 %v1076_v19 }
 0x1b1   :  { %746 = vmatpush.bf16.msra.mxu3 %v1086_v16 }
 0x1b3   :  { %736 = vmatpush.bf16.msrb.mxu2 %v1075_v21 }
 0x1b5   :  { %747 = vmatpush.bf16.msra.mxu3 %v1085_v18 }
 0x1b7   :  { %737 = vmatpush.bf16.msrb.mxu2 %v1074_v29 }
 0x1b9   :  { %748 = vmatpush.bf16.msra.mxu3 %v1084_v20 }
 0x1bb   :  { %738 = vmatpush.bf16.msrb.mxu2 %v1073_v31 }
 0x1bd   :  { %749 = vmatpush.bf16.msra.mxu3 %v1083_v22 }
 0x1c1   :  { %750 = vmatpush.bf16.msra.mxu3 %v1082_v30 }
 0x1c5   :  { %751 = vmatpush.bf16.msra.mxu3 %v1081_v32 }
 0x22b   :  { %v417_v58 = vpop.f32.mrf.mxu3 }
 0x22c   :  { %v418_v59 = vadd.f32 %v417_v58, %v379_v57 }
 0x22e   :  { %v421_v60 = vmax.f32 %v418_v59, 0.0 }
 0x230   :  { %v422_v61 = vpack.c.bf16 %v421_v60, %v421_v60 }
 0x232   :  { %896 = vmatmul.msk.bf16.vlgmr.msrb.gmra.mxu3 %vm404_vm0, %v422_v61 }
 0x233   :  { %v419_v62 = vpop.f32.mrf.mxu3 }
 0x2b5   :  { %v468_v24 = vpop.f32.mrf.mxu3 }
 0x2b6   :  { %v469_v25 = vadd.f32 %v468_v24, %v431_v23 }
 0x2b8   :  { %v472_v26 = vmax.f32 %v469_v25, 0.0 }
 0x2ba   :  { %v473_v27 = vpack.c.bf16 %v472_v26, %v472_v26 }
 0x2bc   :  { %580 = vmatmul.bf16.vlgmr.msrb.gmra.mxu0 %v473_v27  ;;  %593 = vmatmul.bf16.vlgmr.msrb.gmra.mxu1 %v473_v27 }
 0x2bd   :  { %v470_v28 = vpop.f32.mrf.mxu3 }
 0x339   :  { %v581_v35 = vpop.f32.mrf.mxu0  ;;  %v594_v36 = vpop.f32.mrf.mxu1 }
 0x33a   :  { %v582_v37 = vadd.f32 %v581_v35, %v490_v33  ;;  %v595_v38 = vadd.f32 %v594_v36, %v491_v34 }
 0x33c   :  { %v598_v39 = vmax.f32 %v582_v37, 0.0  ;;  %v599_v42 = vmax.f32 %v595_v38, 0.0 }
 0x33e   :  { %v600_v43 = vpack.c.bf16 %v598_v39, %v598_v39  ;;  %v601_v44 = vpack.c.bf16 %v599_v42, %v599_v42 }
 0x340   :  { %739 = vmatmul.bf16.vlgmr.msrb.gmra.mxu2 %v600_v43  ;;  %752 = vmatmul.bf16.vlgmr.msra.gmra.mxu3 %v601_v44 }
 0x341   :  { %v583_v45 = vpop.f32.mrf.mxu0  ;;  %v596_v46 = vpop.f32.mrf.mxu1 }
 0x3c3   :  { %v740_v48 = vpop.f32.mrf.mxu2  ;;  %v753_v49 = vpop.f32.mrf.mxu3 }
 0x3c4   :  { %v741_v50 = vadd.f32 %v740_v48, %v634_v47 }
 0x3c6   :  { %v754_v51 = vadd.f32 %v753_v49, %v741_v50 }
 0x3c8   :  { %758 = vst.msk [vmem:[%s1341_s9] sm:$0xff] %vm757_vm1, %v754_v51 }
 0x3cb   :  { %v742_v41 = vpop.f32.mrf.mxu2  ;;  %v755_v52 = vpop.f32.mrf.mxu3 }
 0x3cc   :  { %763 = vsyncpa [#allocation3], 1 }
 0x3cd   :  { %764 = vsyncpa [#allocation5], 1 }

</bundles_post_ra>
